<compile_context>
chip_gen: v7x
topology: tpu7x:2x2x1
jax: 0.10.0
libtpu: 0.0.40
codegen_flags: <defaults>
</compile_context>

<pallas_src>
import functools

import jax
import jax.numpy as jnp
from jax.experimental import pallas as pl
from jax.experimental.pallas import tpu as pltpu


def _ln_proj_kernel(x_ref, g_ref, b_ref, p_ref, o_ref, *, eps, tl, nj):
    # x_ref : (1, L, C)   one image's tokens, CLS row included (resident across j)
    # g_ref : (1, C)      ln_post.weight
    # b_ref : (1, C)      ln_post.bias
    # p_ref : (C, D)      visual.proj (bf16 by default)
    # o_ref : (1, tl, D)  output rows [j*tl, (j+1)*tl) of image b
    j = pl.program_id(1) if nj > 1 else 0          # static slice when single tile
    x = x_ref[0, pl.ds(1 + j * tl, tl), :].astype(jnp.float32)   # drop CLS row

    # LayerNorm over the channel dim; rsqrt lands on the otherwise idle EUP slot.
    mu = jnp.mean(x, axis=-1, keepdims=True)
    xc = x - mu
    var = jnp.mean(xc * xc, axis=-1, keepdims=True)
    xn = xc * jax.lax.rsqrt(var + eps)
    h = xn * g_ref[...].astype(jnp.float32) + b_ref[...].astype(jnp.float32)

    # Projection on the MXU: feed the matmul in proj's dtype (native bf16 on
    # v6e/v7x, 2-4x MXU throughput vs f32), accumulate in f32.
    p = p_ref[...]
    if p.dtype != jnp.float32:
        h = h.astype(p.dtype)
    y = jnp.dot(h, p, preferred_element_type=jnp.float32)
    o_ref[0] = y.astype(o_ref.dtype)


def _vmem_limit_bytes():
    """Generation-aware scoped-VMEM request with ~25% headroom."""
    cap = 64 * 1024 * 1024                      # safe minimum (v7x per-TC VMEM)
    try:
        cap = int(pltpu.get_tpu_info().vmem_capacity_bytes)
    except Exception:
        pass
    return min(max(cap * 3 // 4, 32 * 1024 * 1024), 96 * 1024 * 1024)


def _const_spec(shape):
    """BlockSpec for a grid-invariant operand: fetched once, single VMEM buffer."""
    idx = lambda *_: (0,) * len(shape)
    try:
        return pl.BlockSpec(shape, idx, pipeline_mode=pl.Buffered(1))
    except (TypeError, AttributeError):         # older jax without pipeline_mode
        return pl.BlockSpec(shape, idx)


def _pick_row_tile(n_rows, n_images, per_row_bytes, fixed_bytes, vmem_limit):
    """Largest exact row tile that fits the VMEM budget (cap 1024 rows)."""
    avail = max(vmem_limit - fixed_bytes, 8 * per_row_bytes)
    cap = min(1024, avail // per_row_bytes)     # >1K rows buys <1-2% roofline
    if n_images == 1 and n_rows >= 16 and n_rows % 16 == 0:
        cap = min(cap, n_rows // 2)             # >=2 grid steps for v7x megacore
    if n_rows <= cap:
        return n_rows                           # whole image in one tile
    # Largest multiple-of-8 divisor of n_rows <= cap: exact tiling -> no OOB
    # reads from the resident image block, no masked stores.
    start = int(cap) - int(cap) % 8
    for t in range(start, 7, -8):
        if n_rows % t == 0:
            return t
    return n_rows                               # pathological L-1: single tile


def ln_proj_image_tokens(x, gamma, beta, proj, *, eps=1e-5, row_tile=None,
                         out_dtype=None, vmem_limit_bytes=None):
    """Fused LayerNorm(x[..., 1:, :]) @ proj for ViT tokens x of shape [..., L, C]."""
    *lead, L, C = x.shape
    C2, D = proj.shape
    assert C2 == C and gamma.shape == (C,) and beta.shape == (C,)
    assert L >= 2, "need at least one non-CLS token"
    if out_dtype is None:
        out_dtype = x.dtype                     # bf16 output possible if tolerated

    B = 1
    for d in lead:
        B *= d
    x3 = x.reshape(B, L, C)                     # leading-dim flatten only (free)

    if vmem_limit_bytes is None:
        vmem_limit_bytes = _vmem_limit_bytes()

    n_rows = L - 1
    if row_tile is None:
        in_b = jnp.dtype(x.dtype).itemsize
        out_b = jnp.dtype(out_dtype).itemsize
        p_b = jnp.dtype(proj.dtype).itemsize
        # Resident regardless of the row tile: double-buffered image block,
        # single-buffered weights.
        fixed = 2 * L * C * in_b + C * D * p_b + 2 * C * 4
        # Per output row: double-buffered out tile + ~4 f32 LN temps (+slack)
        # + f32 matmul result (+slack).
        per_row = 2 * D * out_b + 5 * C * 4 + 2 * D * 4
        row_tile = _pick_row_tile(n_rows, B, per_row, fixed, vmem_limit_bytes)
    tl = int(row_tile)
    nj = n_rows // tl
    assert nj * tl == n_rows, "row_tile must divide L-1"

    kernel = functools.partial(_ln_proj_kernel, eps=eps, tl=tl, nj=nj)

    out = pl.pallas_call(
        kernel,
        out_shape=jax.ShapeDtypeStruct((B, n_rows, D), out_dtype),
        grid_spec=pltpu.PrefetchScalarGridSpec(
            num_scalar_prefetch=0,
            grid=(B, nj),
            in_specs=[
                # Whole image resident across the inner row-tile axis; the CLS
                # drop happens inside the kernel -> no wrapper-side HBM copy.
                pl.BlockSpec((1, L, C), lambda b, j: (b, 0, 0)),
                _const_spec((1, C)),            # gamma, fetched once
                _const_spec((1, C)),            # beta,  fetched once
                _const_spec((C, D)),            # proj,  fetched once
            ],
            out_specs=pl.BlockSpec((1, tl, D), lambda b, j: (b, j, 0)),
        ),
        compiler_params=pltpu.CompilerParams(
            dimension_semantics=("parallel", "parallel"),
            vmem_limit_bytes=int(vmem_limit_bytes)),
    )(x3, gamma.reshape(1, C), beta.reshape(1, C), proj)

    return out.reshape(*lead, n_rows, D)


def linear_layer_forward(tokens, params, *, mxu_dtype=jnp.bfloat16):
    """LinearLayer.forward, ViT path: [LN(t[:, 1:, :]) @ proj for t in tokens].

    Returns a new list instead of mutating `tokens` in place.  The per-token
    loop is kept (instead of stacking the list into one array) because a stack
    would reintroduce exactly the extra HBM pass the fused CLS drop removes;
    per-call overhead is a few microseconds and proj is only ~1.5 MiB in bf16.
    """
    # TODO(synk): the non-ViT branch (self.fc over 4-D CNN features) is
    # `assert 1 == 2, 'Not completed!'` in the reference and is not implemented.
    gamma, beta, proj = params["ln_weight"], params["ln_bias"], params["proj"]
    if mxu_dtype is not None and proj.dtype != mxu_dtype:
        proj = proj.astype(mxu_dtype)           # native bf16 MXU path
    outs = []
    for t in tokens:
        assert t.ndim == 3, "CNN branch is 'Not completed!' in the reference module"
        outs.append(ln_proj_image_tokens(t, gamma, beta, proj))
    return outs


if __name__ == "__main__":
    key = jax.random.PRNGKey(0)
    k_ln_w, k_ln_b, k_proj, k_t0, k_t1 = jax.random.split(key, 5)

    # Small ViT-like shapes, lane-dense last dims:
    #   B=2 images, L=17 tokens (1 CLS + 4x4 patches), C=128 width, D=256 proj,
    #   k=2 feature levels in the tokens list.
    B, L, C, D = 2, 17, 128, 256
    params = {
        "ln_weight": 1.0 + 0.1 * jax.random.normal(k_ln_w, (C,), dtype=jnp.float32),
        "ln_bias": 0.1 * jax.random.normal(k_ln_b, (C,), dtype=jnp.float32),
        "proj": jax.random.normal(k_proj, (C, D), dtype=jnp.float32) / jnp.sqrt(C),
    }
    tokens = [
        jax.random.normal(k_t0, (B, L, C), dtype=jnp.float32),
        jax.random.normal(k_t1, (B, L, C), dtype=jnp.float32),
    ]

    outs = jax.block_until_ready(linear_layer_forward(tokens, params))
    assert all(o.shape == (B, L - 1, D) for o in outs), [o.shape for o in outs]

    # Plain-JAX reference with the same precision choices as the kernel
    # (f32 LayerNorm, bf16 matmul operands, f32 accumulation).
    proj_bf16 = params["proj"].astype(jnp.bfloat16)

    def ref_one(t):
        x = t[:, 1:, :].astype(jnp.float32)
        mu = jnp.mean(x, axis=-1, keepdims=True)
        var = jnp.mean((x - mu) ** 2, axis=-1, keepdims=True)
        xn = (x - mu) / jnp.sqrt(var + 1e-5)
        h = xn * params["ln_weight"] + params["ln_bias"]
        return jnp.dot(h.astype(jnp.bfloat16), proj_bf16,
                       preferred_element_type=jnp.float32)

    for t, o in zip(tokens, outs):
        r = ref_one(t)
        err = float(jnp.max(jnp.abs(o - r)))
        assert jnp.allclose(o, r, atol=2e-2, rtol=2e-2), err

    print("KERNEL_OK")
</pallas_src>

<mosaic_0001>
module attributes {stable_mosaic.version = 11 : i64} {
  func.func @_ln_proj_kernel(%arg0: i32, %arg1: i32, %arg2: memref<1x17x128xf32, #tpu.memory_space<vmem>>, %arg3: memref<1x128xf32, #tpu.memory_space<vmem>>, %arg4: memref<1x128xf32, #tpu.memory_space<vmem>>, %arg5: memref<128x256xbf16, #tpu.memory_space<vmem>>, %arg6: memref<1x16x256xf32, #tpu.memory_space<vmem>>) attributes {dimension_semantics = [#tpu.dimension_semantics<parallel>, #tpu.dimension_semantics<parallel>], iteration_bounds = array<i64: 2, 1>, scalar_prefetch = 0 : i64, scratch_operands = 0 : i64, tpu.core_type = #tpu.core_type<tc>, window_params = [{transform_indices = @transform_0, window_bounds = array<i64: 1, 17, 128>}, {pipeline_mode = #tpu.pipeline_mode<synchronous>, transform_indices = @transform_1, window_bounds = array<i64: 1, 128>}, {pipeline_mode = #tpu.pipeline_mode<synchronous>, transform_indices = @transform_2, window_bounds = array<i64: 1, 128>}, {pipeline_mode = #tpu.pipeline_mode<synchronous>, transform_indices = @transform_3, window_bounds = array<i64: 128, 256>}, {transform_indices = @transform_4, window_bounds = array<i64: 1, 16, 256>}]} {
    %c0 = arith.constant 0 : index
    %c1 = arith.constant 1 : index
    %c0_0 = arith.constant 0 : index
    %0 = vector.load %arg2[%c0, %c1, %c0_0] : memref<1x17x128xf32, #tpu.memory_space<vmem>>, vector<1x16x128xf32>
    %1 = vector.shape_cast %0 : vector<1x16x128xf32> to vector<16x128xf32>
    %cst = arith.constant dense<0.000000e+00> : vector<16xf32>
    %2 = vector.multi_reduction <add>, %1, %cst [1] : vector<16x128xf32> to vector<16xf32>
    %3 = vector.shape_cast %2 : vector<16xf32> to vector<16x1xf32>
    %cst_1 = arith.constant 1.280000e+02 : f32
    %4 = vector.broadcast %cst_1 : f32 to vector<16x1xf32>
    %5 = arith.divf %3, %4 : vector<16x1xf32>
    %6 = vector.broadcast %5 : vector<16x1xf32> to vector<16x128xf32>
    %7 = arith.subf %1, %6 : vector<16x128xf32>
    %8 = arith.mulf %7, %7 : vector<16x128xf32>
    %cst_2 = arith.constant dense<0.000000e+00> : vector<16xf32>
    %9 = vector.multi_reduction <add>, %8, %cst_2 [1] : vector<16x128xf32> to vector<16xf32>
    %10 = vector.shape_cast %9 : vector<16xf32> to vector<16x1xf32>
    %cst_3 = arith.constant 1.280000e+02 : f32
    %11 = vector.broadcast %cst_3 : f32 to vector<16x1xf32>
    %12 = arith.divf %10, %11 : vector<16x1xf32>
    %cst_4 = arith.constant 9.99999974E-6 : f32
    %13 = vector.broadcast %cst_4 : f32 to vector<16x1xf32>
    %14 = arith.addf %12, %13 : vector<16x1xf32>
    %15 = math.rsqrt %14 : vector<16x1xf32>
    %16 = vector.broadcast %15 : vector<16x1xf32> to vector<16x128xf32>
    %17 = arith.mulf %7, %16 : vector<16x128xf32>
    %c0_5 = arith.constant 0 : index
    %c0_6 = arith.constant 0 : index
    %18 = vector.load %arg3[%c0_5, %c0_6] : memref<1x128xf32, #tpu.memory_space<vmem>>, vector<1x128xf32>
    %19 = vector.broadcast %18 : vector<1x128xf32> to vector<16x128xf32>
    %20 = arith.mulf %17, %19 : vector<16x128xf32>
    %c0_7 = arith.constant 0 : index
    %c0_8 = arith.constant 0 : index
    %21 = vector.load %arg4[%c0_7, %c0_8] : memref<1x128xf32, #tpu.memory_space<vmem>>, vector<1x128xf32>
    %22 = vector.broadcast %21 : vector<1x128xf32> to vector<16x128xf32>
    %23 = arith.addf %20, %22 : vector<16x128xf32>
    %c0_9 = arith.constant 0 : index
    %c0_10 = arith.constant 0 : index
    %24 = vector.load %arg5[%c0_9, %c0_10] : memref<128x256xbf16, #tpu.memory_space<vmem>>, vector<128x256xbf16>
    %25 = arith.truncf %23 : vector<16x128xf32> to vector<16x128xbf16>
    %cst_11 = arith.constant dense<0.000000e+00> : vector<16x256xf32>
    %26 = tpu.matmul %25, %24, %cst_11 {dimension_numbers = #tpu.dot_dimension_numbers<[1], [0], [0], [1], [0, 0, 1, 1], [], []>} : vector<16x128xbf16>, vector<128x256xbf16>, vector<16x256xf32> -> vector<16x256xf32>
    %c0_12 = arith.constant 0 : index
    %c0_13 = arith.constant 0 : index
    %c0_14 = arith.constant 0 : index
    %27 = vector.load %arg6[%c0_12, %c0_13, %c0_14] : memref<1x16x256xf32, #tpu.memory_space<vmem>>, vector<1x16x256xf32>
    %28 = vector.shape_cast %27 : vector<1x16x256xf32> to vector<16x256xf32>
    %29 = vector.shape_cast %26 : vector<16x256xf32> to vector<1x16x256xf32>
    tpu.vector_store %arg6[%c0_12, %c0_13, %c0_14], %29 {strides = array<i32>} : memref<1x16x256xf32, #tpu.memory_space<vmem>>, vector<1x16x256xf32>,
    return
  }
  func.func @transform_0(%arg0: i32, %arg1: i32) -> (i32, i32, i32) {
    %c0_i32 = arith.constant 0 : i32
    %c0_i32_0 = arith.constant 0 : i32
    %c0_i32_1 = arith.constant 0 : i32
    return %arg0, %c0_i32, %c0_i32_0 : i32, i32, i32
  }
  func.func @transform_1(%arg0: i32, %arg1: i32) -> (i32, i32) {
    %c0_i32 = arith.constant 0 : i32
    %c0_i32_0 = arith.constant 0 : i32
    %c0_i32_1 = arith.constant 0 : i32
    return %c0_i32, %c0_i32_0 : i32, i32
  }
  func.func @transform_2(%arg0: i32, %arg1: i32) -> (i32, i32) {
    %c0_i32 = arith.constant 0 : i32
    %c0_i32_0 = arith.constant 0 : i32
    %c0_i32_1 = arith.constant 0 : i32
    return %c0_i32, %c0_i32_0 : i32, i32
  }
  func.func @transform_3(%arg0: i32, %arg1: i32) -> (i32, i32) {
    %c0_i32 = arith.constant 0 : i32
    %c0_i32_0 = arith.constant 0 : i32
    %c0_i32_1 = arith.constant 0 : i32
    return %c0_i32, %c0_i32_0 : i32, i32
  }
  func.func @transform_4(%arg0: i32, %arg1: i32) -> (i32, i32, i32) {
    %c0_i32 = arith.constant 0 : i32
    %c0_i32_0 = arith.constant 0 : i32
    return %arg0, %arg1, %c0_i32 : i32, i32, i32
  }
}

</mosaic_0001>

<bundles_post_ra>
// kernel: tpu_custom_call.1
= control target key start
LH: loop header
LB: loop body
LE: loop exit
PB: predicated region body
PF: predicated region fallthrough
CT: control target
= control target key end

     0   :  { %9 = vsyncpa [#allocation3], 0  ;;  %s952_s0 = inlined_call_operand.vmem [shape: f32[2,17,128], index: 0, kind: input, shape index: {}]   ;;  %s953_s1 = inlined_call_operand.vmem [shape: f32[1,128], index: 1, kind: input, shape index: {}]   ;;  %s954_s2 = inlined_call_operand.vmem [shape: f32[1,128], index: 2, kind: input, shape index: {}]   ;;  %s955_s3 = inlined_call_operand.hbm [shape: bf16[128,256], index: 3, kind: input, shape index: {}]   ;;  %s956_s4 = inlined_call_operand.hbm [shape: f32[2,16,256], index: 4, kind: output, shape index: {}]  }
   0x1   :  { %10 = vsyncpa [#allocation4], 0 }
   0x2   :  { %12 = vsyncpa [#allocation4 + $0x1], 0  ;;  %s793_s15 = smov 0   ;;  %s795_s16 = smov 0  }
   0x3   :  { %s797_s17 = smov 0   ;;  %s799_s18 = smov 0  }
   0x4   :  { %s801_s19 = smov 0   ;;  %s803_s20 = smov 0  }
   0x5 LB: > { %s516_s21 = sadd.s32 4294967295, %s759_s20   ;;  %s517_s22 = sadd.s32 4294967294, %s759_s20   ;;  %s759_s20 = sphi %s803_s20, %s18_s20   ;;  %s755_s19 = sphi %s801_s19, %s974_s19   ;;  %s751_s18 = sphi %s799_s18, %s973_s18   ;;  %s747_s17 = sphi %s797_s17, %s972_s17   ;;  %s743_s16 = sphi %s795_s16, %s971_s16   ;;  %s739_s15 = sphi %s793_s15, %s970_s15  }
   0x6   : > { %s30_s23 = sadd.s32 1, %s755_s19  ;;  %s128_s24 = sadd.s32 1, %s747_s17 }
   0x7   : > { %p32_p0 = scmp.ge.s32.totalorder %s30_s23, 2  ;;  %p138_p1 = scmp.ne.s32.totalorder %s747_s17, %s743_s16 }
   0x8   : > { %p139_p2 = scmp.eq.s32.totalorder %s516_s21, 1  ;;  %p144_p3 = scmp.ne.s32.totalorder %s743_s16, %s739_s15 }
   0x9   : > { %s976_s23 = smov (%p32_p0, %s30_s23), 0  ;;  %p145_p5 = scmp.eq.s32.totalorder %s517_s22, 1 }
   0xa   : > { %p833_p4 = por %p139_p2, %p138_p1  ;;  %s123_s26 = ssub.s32 %s755_s19, %s976_s23 }
   0xb   : > { %p518_p6 = scmp.ge.s32.totalorder %s759_s20, 1  ;;  %p126_p7 = scmp.eq.s32.totalorder %s123_s26, 0 }
   0xc   : > { %s961_s25 = scalar_select %p833_p4, 1, 0 }
   0xd   : > { %p840_p8 = por %p145_p5, %p144_p3  ;;  %p152_p9 = scmp.lt.s32.totalorder %s759_s20, 3 }
   0xe   : > { %s846_s28 = scalar_select %p126_p7, %s747_s17, %s128_s24  }
   0xf   : > { %s962_s27 = scalar_select %p840_p8, 1, 0 }
  0x10   : > { %p848_p10 = pnand %p518_p6, %p152_p9  ;;  %p852_p11 = scmp.eq.s32.totalorder %s516_s21, 0 }
  0x11   : > { %s761_s5 = smov [#allocation2]   ;;  %s649_s10 = scalar_lea.hbm %s955_s3, 2048 }
  0x12   : > { %s963_s29 = scalar_select %p848_p10, 1, 0 }
  0x13   : > { %s964_s30 = scalar_select %p852_p11, 1, 0 }
  0x14   : > { %p556_p12 = pneg %p848_p10  ;;  %s170_s6 = sshll.u32 %s761_s5, 4  ;;  %s171_s6 = int_to_ptr.vmem [resolvable:$true] %s170_s6 }
  0x15   : > { %p650_p0 = scmp.ne.s32.totalorder %s955_s3, %s649_s10  ;;  %p656_p5 = scmp.lt.u32.totalorder %s649_s10, %s955_s3 }
  0x16   : > { %p860_p13 = pnand %p852_p11, %p556_p12 }
  0x18   : > { %p651_p1 = pneg %p860_p13 }
  0x1a   : > { %p652_p2 = pnand %p651_p1, %p650_p0 }
  0x1c   : > { %p653_p3 = pneg %p652_p2 }
  0x1e   : > { %p658_p6 = pnand %p656_p5, %p653_p3 }
  0x20   : > { %661 = shalt.err (!%p658_p6)
}
  0x21   : > { %s662_s21 = scalar_lea.vmem %s171_s6, 2048  ;;  %p670_p8 = scmp.lt.s32.totalorder %s171_s6, %s171_s6 }
  0x22   : > { %p663_p7 = scmp.ne.s32.totalorder %s171_s6, %s662_s21  ;;  %p671_p4 = scmp.lt.s32.totalorder %s662_s21, %s662_s21 }
  0x24   : > { %p665_p9 = pnand %p663_p7, %p651_p1  ;;  %p672_p11 = por %p671_p4, %p670_p8 }
  0x26   : > { %p666_p12 = pneg %p665_p9 }
  0x28   : > { %p673_p10 = pnand %p672_p11, %p666_p12 }
  0x2a   : > { %676 = shalt.err (!%p673_p10)
}
  0x2b   : > { %s762_s22 = smov 128   ;;  %s763_s24 = smov 8  }
  0x2c   : > { %559 = dma.hbm_to_vmem [thread:$0]  (!%p860_p13), %s955_s3, 2048, %s171_s6, [#allocation3], %s762_s22, %s762_s22, %s763_s24  }
  0x2d   : > { %p966_p0 = scmp.ne.s32.totalorder %s963_s29, 0 }
  0x2e   : > { %p967_p2 = scmp.ne.s32.totalorder (!%p966_p0), %s964_s30, 0 }
  0x2f   : > { %194 = sbr.rel (%p966_p0) target bundleno = 610 (0x262), region = 36 }
  0x36   : > { %730 = dma.done.wait (%p967_p2), [#allocation3], 2048  }
  0x37   : > { %732 = vsyncadd (%p967_p2), [#allocation3], 4294965248  ;;  %p220_p4 = scmp.lt.s32.totalorder %s751_s18, 1  ;;  %v621_v2 = vld [vmem:[#allocation2 + $0x4] ss:$8 sps:$4 sm:$0xff]   ;;  %v764_v21 = vmov 0  }
  0x38   : > { %v623_v3 = vld [vmem:[#allocation2] ss:$8 sps:$4 sm:$0xff]   ;;  %v624_v4 = vld [vmem:[#allocation2 + $0x14] ss:$8 sps:$4 sm:$0xff]   ;;  %367 = vmatprep.subr.bf16.mxu0 %v621_v2  ;;  %v626_v13 = vld [vmem:[#allocation2 + $0x10] ss:$8 sps:$4 sm:$0xff]   ;;  %399 = vmatprep.mubr.bf16.mxu0 %v764_v21 }
  0x39   : > { %s221_s8 = scalar_select %p220_p4, %s751_s18, 1  ;;  %368 = vmatpush1.bf16.msra.mxu0 %v623_v3  ;;  %v627_v14 = vld [vmem:[#allocation2 + $0x24] ss:$8 sps:$4 sm:$0xff]   ;;  %v629_v15 = vld [vmem:[#allocation2 + $0x20] ss:$8 sps:$4 sm:$0xff]  }
  0x3a   : > { %369 = vmatprep.subr.bf16.mxu0 %v624_v4  ;;  %v630_v16 = vld [vmem:[#allocation2 + $0x34] ss:$8 sps:$4 sm:$0xff]   ;;  %v632_v17 = vld [vmem:[#allocation2 + $0x30] ss:$8 sps:$4 sm:$0xff]   ;;  %v633_v18 = vld [vmem:[#allocation2 + $0x44] ss:$8 sps:$4 sm:$0xff]  }
  0x3b   : > { %s549_s9 = smul.u32 24, %s221_s8  ;;  %v635_v19 = vld [vmem:[#allocation2 + $0x40] ss:$8 sps:$4 sm:$0xff]   ;;  %v636_v20 = vld [vmem:[#allocation2 + $0x54] ss:$8 sps:$4 sm:$0xff]   ;;  %s217_s13 = sand.u32 1, %s743_s16  }
  0x3c   : > { %v638_v22 = vld [vmem:[#allocation2 + $0x50] ss:$8 sps:$4 sm:$0xff]   ;;  %v639_v23 = vld [vmem:[#allocation2 + $0x64] ss:$8 sps:$4 sm:$0xff]   ;;  %v641_v24 = vld [vmem:[#allocation2 + $0x60] ss:$8 sps:$4 sm:$0xff]  }
  0x3d   : > { %s224_s11 = scalar_lea.vmem %s952_s0, %s549_s9  ;;  %370 = vmatpush1.bf16.msra.mxu0 %v626_v13  ;;  %v642_v25 = vld [vmem:[#allocation2 + $0x74] ss:$8 sps:$4 sm:$0xff]   ;;  %v644_v26 = vld [vmem:[#allocation2 + $0x70] ss:$8 sps:$4 sm:$0xff]   ;;  %s523_s14 = sshll.u32 %s217_s13, 5 }
  0x3e   : > { %v227_v0 = vld [vmem:[%s224_s11 + $0x1] sm:$0xff]  ;;  %v228_v1 = vld [vmem:[%s224_s11 + $0x9] sm:$0xff]  ;;  %371 = vmatprep.subr.bf16.mxu0 %v627_v14  ;;  %v525_v35 = vld [vmem:[%s953_s1] ss:$0 sm:$0xff]  ;;  %s219_s21 = scalar_lea.vmem [#allocation5], %s523_s14  ;;  %s548_s24 = sshll.u32 %s751_s18, 9 }
  0x3f   : > { %229 = vadd.xlane.f32.xlu0 %v227_v0  ;;  %v526_v39 = vld [vmem:[%s954_s2] ss:$0 sm:$0xff]  ;;  %s431_s22 = sshll.u32 %s219_s21, 4  ;;  %s904_s8 = scalar_lea.hbm %s956_s4, %s548_s24  ;;  %s899_s22 = int_to_ptr.vmem [resolvable:$true] %s431_s22 }
  0x40   : > { %s906_s9 = scalar_lea.sflag [#allocation4], %s217_s13  ;;  %s677_s18 = scalar_lea.vmem %s899_s22, 512 }
  0x41   : > { %372 = vmatpush1.bf16.msra.mxu0 %v629_v15  ;;  %p678_p8 = scmp.ne.s32.totalorder %s899_s22, %s677_s18  ;;  %p968_p10 = scmp.ne.s32.totalorder %s961_s25, 0 }
  0x42   : > { %373 = vmatprep.subr.bf16.mxu0 %v630_v16  ;;  %s765_s10 = smov [#allocation5]  }
  0x43   : > { %231 = vadd.xlane.f32.xlu0 %v228_v1  ;;  %p679_p11 = pnand %p678_p8, %p968_p10  ;;  %s681_s7 = sshll.u32 %s765_s10, 4  ;;  %s682_s7 = int_to_ptr.vmem [resolvable:$false] %s681_s7 }
  0x44   : > { %s683_s11 = scalar_lea.vmem %s682_s7, 1024  ;;  %p684_p1 = scmp.lt.s32.totalorder %s899_s22, %s682_s7 }
  0x45   : > { %374 = vmatpush1.bf16.msra.mxu0 %v632_v17  ;;  %p680_p13 = pneg %p679_p11  ;;  %p685_p3 = scmp.lt.s32.totalorder %s683_s11, %s677_s18 }
  0x46   : > { %375 = vmatprep.subr.bf16.mxu0 %v633_v18 }
  0x47   : > { %p686_p5 = por %p685_p3, %p684_p1 }
  0x49   : > { %376 = vmatpush1.bf16.msra.mxu0 %v635_v19  ;;  %p687_p6 = pnand %p686_p5, %p680_p13 }
  0x4a   : > { %377 = vmatprep.subr.bf16.mxu0 %v636_v20 }
  0x4d   : > { %378 = vmatpush1.bf16.msra.mxu0 %v638_v22 }
  0x4e   : > { %379 = vmatprep.subr.bf16.mxu0 %v639_v23 }
  0x51   : > { %380 = vmatpush1.bf16.msra.mxu0 %v641_v24 }
  0x52   : > { %381 = vmatprep.subr.bf16.mxu0 %v642_v25 }
  0x55   : > { %382 = vmatpush1.bf16.msra.mxu0 %v644_v26 }
  0xcc   : > { %v230_v5 = vpop.xlane.xlu0 %229 }
  0xcd   : > { %v234_v6 = vmul.f32 0.0078125, %v230_v5 }
  0xcf   : > { %v236_v7 = vsub.f32 %v227_v0, %v234_v6 }
  0xd0   : > { %v232_v8 = vpop.xlane.xlu0 %231 }
  0xd1   : > { %v235_v9 = vmul.f32 0.0078125, %v232_v8  ;;  %v238_v10 = vmul.f32 %v236_v7, %v236_v7 }
  0xd3   : > { %v237_v11 = vsub.f32 %v228_v1, %v235_v9  ;;  %240 = vadd.xlane.f32.xlu1 %v238_v10 }
  0xd5   : > { %v239_v12 = vmul.f32 %v237_v11, %v237_v11 }
  0xd7   : > { %242 = vadd.xlane.f32.xlu1 %v239_v12 }
 0x160   : > { %v241_v27 = vpop.xlane.xlu1 %240 }
 0x161   : > { %v244_v28 = vmul.f32 0.0078125, %v241_v27 }
 0x163   : > { %v246_v29 = vadd.f32 1e-05, %v244_v28 }
 0x164   : > { %v243_v30 = vpop.xlane.xlu1 %242 }
 0x165   : > { %645 = vrsqrt.f32 %v246_v29  ;;  %v245_v31 = vmul.f32 0.0078125, %v243_v30 }
 0x167   : > { %v247_v32 = vadd.f32 1e-05, %v245_v31 }
 0x169   : > { %647 = vrsqrt.f32 %v247_v32 }
 0x16f   : > { %v646_v33 = vpop.eup %645 }
 0x170   : > { %v250_v34 = vmul.f32 %v646_v33, %v236_v7 }
 0x172   : > { %v259_v38 = vmul.f32 %v525_v35, %v250_v34 }
 0x173   : > { %v648_v36 = vpop.eup %647 }
 0x174   : > { %v251_v37 = vmul.f32 %v648_v36, %v237_v11  ;;  %v268_v41 = vadd.f32 %v526_v39, %v259_v38 }
 0x176   : > { %v260_v40 = vmul.f32 %v525_v35, %v251_v37 }
 0x178   : > { %v269_v42 = vadd.f32 %v526_v39, %v260_v40 }
 0x17a   : > { %v286_v43 = vpack.c.bf16 %v269_v42, %v268_v41 }
 0x17c   : > { %400 = vmatmul.mubr.bf16.vlgmr.msra.gmra.mrb[0].mxu0 %v286_v43 }
 0x24f   : > { %v401_v44 = vpop.f32.mrb[0].mxu0 }
 0x250   : > { %410 = vst [vmem:[%s219_s21] sm:$0xff] %v401_v44  ;;  %v403_v45 = vpop.f32.mrb[1].mxu0 }
 0x251   : > { %411 = vst [vmem:[%s219_s21 + $0x8] sm:$0xff] %v403_v45  ;;  %v405_v46 = vpop.f32.mrb[2].mxu0 }
 0x252   : > { %412 = vst [vmem:[%s219_s21 + $0x10] sm:$0xff] %v405_v46  ;;  %v407_v47 = vpop.f32.mrb[3].mxu0 }
 0x253   : > { %413 = vst [vmem:[%s219_s21 + $0x18] sm:$0xff] %v407_v47 }
 0x254   : > { %690 = shalt.err (!%p687_p6)
}
 0x255   : > { %s691_s29 = scalar_lea.hbm %s904_s8, 512  ;;  %s695_s12 = scalar_lea.hbm %s956_s4, 1024 }
 0x256   : > { %p692_p7 = scmp.ne.s32.totalorder %s904_s8, %s691_s29  ;;  %p696_p0 = scmp.lt.u32.totalorder %s904_s8, %s956_s4 }
 0x257   : > { %p697_p2 = scmp.lt.u32.totalorder %s695_s12, %s691_s29  ;;  %p699_p8 = scmp.lt.u32.totalorder %s691_s29, %s904_s8 }
 0x258   : > { %p693_p9 = pnand %p692_p7, %p968_p10 }
 0x259   : > { %p698_p4 = por %p697_p2, %p696_p0 }
 0x25a   : > { %p694_p12 = pneg %p693_p9 }
 0x25b   : > { %p700_p11 = por %p699_p8, %p698_p4 }
 0x25d   : > { %p701_p13 = pnand %p700_p11, %p694_p12 }
 0x25f   : > { %704 = shalt.err (!%p701_p13)
}
 0x260   : > { %s766_s21 = smov 256   ;;  %s767_s24 = smov 16  }
 0x261   : > { %554 = dma.vmem_to_hbm [thread:$0]  (%p968_p10), %s899_s22, 512, %s904_s8, %s906_s9, %s766_s21, %s766_s21, %s767_s24  }
 0x262 PF: > { %p566_p1 = scmp.ge.s32.totalorder %s759_s20, 2  ;;  %s446_s26 = sand.u32 1, %s739_s15  }
 0x263   : > { %p969_p3 = scmp.ne.s32.totalorder %s962_s27, 0  ;;  %s447_s5 = scalar_lea.sflag [#allocation4], %s446_s26 }
 0x265   : > { %p561_p5 = pnand %p566_p1, %p969_p3 }
 0x267   : > { %734 = dma.done.wait (!%p561_p5), %s447_s5, 512  }
 0x268   : > { %736 = vsyncadd (!%p561_p5), %s447_s5, 4294966784  ;;  %s18_s20 = sadd.s32 1, %s759_s20   ;;  %s970_s15 = smov %s743_s16 }
 0x269   : > { %p15_p6 = scmp.ge.s32.totalorder %s18_s20, 4   ;;  %s971_s16 = smov %s747_s17 }
 0x26a   : > { %s972_s17 = smov %s846_s28  ;;  %s973_s18 = smov %s755_s19 }
 0x26b   : > { %s974_s19 = smov %s976_s23  ;;  %17 = sbr.rel (!%p15_p6) target bundleno = 5 (0x5), region = 76 }
 0x272   :  { %452 = vsyncpa [#allocation3], 1 }
 0x273   :  { %454 = vsyncpa [#allocation3 + $0x1], 1 }
 0x274   :  { %455 = vsyncpa [#allocation4], 1 }
 0x275   :  { %457 = vsyncpa [#allocation4 + $0x1], 1 }

</bundles_post_ra>
